<compile_context>
chip_gen: v6e
topology: v6e:2x2x1
jax: 0.10.0
libtpu: 0.0.40
codegen_flags: <defaults>
</compile_context>

<pallas_src>
import functools

import jax
import jax.numpy as jnp
from jax import lax
from jax.experimental import pallas as pl
from jax.experimental.pallas import tpu as pltpu

BN_EPS = 1e-5


def _fused_kernel(w_ref, p_ref, o_ref, *, ckk):
    # w_ref: (Cout, CKK+2)  -- columns [0:CKK] = conv weights, [CKK] = gamma,
    #                           [CKK+1] = beta.  Static slices are free.
    w = w_ref[:, :ckk]                       # (Cout, CKK)
    gamma = w_ref[:, ckk:ckk + 1]            # (Cout, 1)
    beta = w_ref[:, ckk + 1:ckk + 2]         # (Cout, 1)

    # Conv as GEMM on the MXU: [Cout, CKK] x [CKK, P] -> [Cout, P]
    # (P on the lane axis -> lane-dense VPU/EUP work downstream.)
    conv = jnp.dot(w, p_ref[...], preferred_element_type=jnp.float32)

    # Conv bias intentionally omitted: a per-channel constant is exactly
    # cancelled by the training-mode BatchNorm mean subtraction below.

    # BatchNorm2d (training mode): per-channel mean / biased variance over all
    # N*OH*OW positions (axis=1 here).
    mean = jnp.mean(conv, axis=1, keepdims=True)        # (Cout, 1)
    xm = conv - mean                                     # centered, computed once
    var = jnp.mean(xm * xm, axis=1, keepdims=True)       # (Cout, 1)
    y = xm * lax.rsqrt(var + BN_EPS) * gamma + beta

    # ReLU then tanh (tanh hits the EUP slot; effectively free here).
    o_ref[...] = jnp.tanh(jnp.maximum(y, 0.0))


def model_tanh_forward(x, conv_w, conv_b, bn_gamma, bn_beta, *, k=5, stride=3):
    """x: (N, Cin, H, W) NCHW. Returns (N, Cout, OH, OW) NCHW float32."""
    N, Cin, H, W = x.shape
    Cout = conv_w.shape[0]
    OH = (H - k) // stride + 1
    OW = (W - k) // stride + 1
    CKK = Cin * k * k
    P = N * OH * OW

    # conv_b is unused on purpose: it is mathematically cancelled by the
    # training-mode BatchNorm mean subtraction inside the kernel.
    del conv_b

    # im2col as a single fused conv HLO: (N, Cin*k*k, OH, OW), feature dim
    # ordered (Cin, kh, kw) -- matches conv_w.reshape ordering (trivially so
    # here since Cin == 1; verify ordering before generalizing to Cin > 1).
    patches = lax.conv_general_dilated_patches(
        x.astype(jnp.float32), (k, k), (stride, stride), padding="VALID")
    # -> (CKK, P): long P axis last so it lands on the lane dimension.
    patches_t = patches.transpose(1, 0, 2, 3).reshape(CKK, P)

    # Pack conv weights + gamma + beta into one operand: 2 input DMAs total.
    w2d = conv_w.reshape(Cout, CKK).astype(jnp.float32)       # (Cout, CKK)
    g2d = bn_gamma.reshape(Cout, 1).astype(jnp.float32)
    beta2d = bn_beta.reshape(Cout, 1).astype(jnp.float32)
    w_aug = jnp.concatenate([w2d, g2d, beta2d], axis=1)       # (Cout, CKK+2)

    cost = pl.CostEstimate(
        flops=2 * Cout * CKK * P,
        transcendentals=Cout * P,
        bytes_accessed=4 * (Cout * (CKK + 2) + CKK * P + Cout * P),
    )

    out = pl.pallas_call(
        functools.partial(_fused_kernel, ckk=CKK),
        out_shape=jax.ShapeDtypeStruct((Cout, P), jnp.float32),
        in_specs=[
            pl.BlockSpec(memory_space=pltpu.MemorySpace.VMEM),
            pl.BlockSpec(memory_space=pltpu.MemorySpace.VMEM),
        ],
        out_specs=pl.BlockSpec(memory_space=pltpu.MemorySpace.VMEM),
        cost_estimate=cost,
    )(w_aug, patches_t)

    # (Cout, P) -> (Cout, N, OH, OW) -> NCHW
    return out.reshape(Cout, N, OH, OW).transpose(1, 0, 2, 3)


def _reference(x, conv_w, conv_b, bn_gamma, bn_beta, *, k=5, stride=3):
    """Pure-JAX reference matching the PyTorch forward (training-mode BN)."""
    conv = lax.conv_general_dilated(
        x.astype(jnp.float32), conv_w.astype(jnp.float32),
        (stride, stride), "VALID",
        dimension_numbers=("NCHW", "OIHW", "NCHW"))
    conv = conv + conv_b.reshape(1, -1, 1, 1)
    mean = jnp.mean(conv, axis=(0, 2, 3), keepdims=True)
    var = jnp.mean((conv - mean) ** 2, axis=(0, 2, 3), keepdims=True)
    xhat = (conv - mean) / jnp.sqrt(var + BN_EPS)
    y = xhat * bn_gamma.reshape(1, -1, 1, 1) + bn_beta.reshape(1, -1, 1, 1)
    return jnp.tanh(jnp.maximum(y, 0.0))
    # Note: BatchNorm running_mean/var updates are training bookkeeping and do
    # not affect the forward output in training mode.


if __name__ == "__main__":
    key = jax.random.PRNGKey(0)
    kx, kw, kb = jax.random.split(key, 3)

    # Shapes implied by the PyTorch module: x = randn(1, 1, 100, 32)
    N, Cin, H, W = 1, 1, 100, 32
    Cout, K, STRIDE = 10, 5, 3
    OH, OW = (H - K) // STRIDE + 1, (W - K) // STRIDE + 1

    x = jax.random.normal(kx, (N, Cin, H, W), dtype=jnp.float32)

    # Deterministic parameter init (synthetic; mirrors PyTorch param shapes).
    fan_in = Cin * K * K
    bound = 1.0 / (fan_in ** 0.5)
    conv_w = jax.random.uniform(kw, (Cout, Cin, K, K), jnp.float32, -bound, bound)
    conv_b = jax.random.uniform(kb, (Cout,), jnp.float32, -bound, bound)
    bn_gamma = jnp.ones((Cout,), jnp.float32)   # BatchNorm2d default weight
    bn_beta = jnp.zeros((Cout,), jnp.float32)   # BatchNorm2d default bias

    fwd = jax.jit(functools.partial(model_tanh_forward, k=K, stride=STRIDE))
    out = jax.block_until_ready(fwd(x, conv_w, conv_b, bn_gamma, bn_beta))

    assert out.shape == (N, Cout, OH, OW)

    ref = _reference(x, conv_w, conv_b, bn_gamma, bn_beta, k=K, stride=STRIDE)
    assert jnp.allclose(out, ref, atol=1e-4, rtol=1e-4), float(
        jnp.max(jnp.abs(out - ref)))

    print("KERNEL_OK")
</pallas_src>

<mosaic_0001>
module attributes {stable_mosaic.version = 11 : i64} {
  func.func @_fused_kernel(%arg0: memref<10x27xf32, #tpu.memory_space<vmem>>, %arg1: memref<25x320xf32, #tpu.memory_space<vmem>>, %arg2: memref<10x320xf32, #tpu.memory_space<vmem>>) attributes {dimension_semantics = [], scalar_prefetch = 0 : i64, scratch_operands = 0 : i64, tpu.core_type = #tpu.core_type<tc>} {
    %c0 = arith.constant 0 : index
    %c0_0 = arith.constant 0 : index
    %0 = vector.load %arg0[%c0, %c0_0] : memref<10x27xf32, #tpu.memory_space<vmem>>, vector<10x25xf32>
    %c0_1 = arith.constant 0 : index
    %c25 = arith.constant 25 : index
    %1 = vector.load %arg0[%c0_1, %c25] : memref<10x27xf32, #tpu.memory_space<vmem>>, vector<10x1xf32>
    %c0_2 = arith.constant 0 : index
    %c26 = arith.constant 26 : index
    %2 = vector.load %arg0[%c0_2, %c26] : memref<10x27xf32, #tpu.memory_space<vmem>>, vector<10x1xf32>
    %c0_3 = arith.constant 0 : index
    %c0_4 = arith.constant 0 : index
    %3 = vector.load %arg1[%c0_3, %c0_4] : memref<25x320xf32, #tpu.memory_space<vmem>>, vector<25x320xf32>
    %cst = arith.constant dense<0.000000e+00> : vector<10x320xf32>
    %4 = tpu.matmul %0, %3, %cst {dimension_numbers = #tpu.dot_dimension_numbers<[1], [0], [0], [1], [0, 0, 1, 1], [], []>} : vector<10x25xf32>, vector<25x320xf32>, vector<10x320xf32> -> vector<10x320xf32>
    %cst_5 = arith.constant dense<0.000000e+00> : vector<10xf32>
    %5 = vector.multi_reduction <add>, %4, %cst_5 [1] : vector<10x320xf32> to vector<10xf32>
    %6 = vector.shape_cast %5 : vector<10xf32> to vector<10x1xf32>
    %cst_6 = arith.constant 3.200000e+02 : f32
    %7 = vector.broadcast %cst_6 : f32 to vector<10x1xf32>
    %8 = arith.divf %6, %7 : vector<10x1xf32>
    %9 = vector.broadcast %8 : vector<10x1xf32> to vector<10x320xf32>
    %10 = arith.subf %4, %9 : vector<10x320xf32>
    %11 = arith.mulf %10, %10 : vector<10x320xf32>
    %cst_7 = arith.constant dense<0.000000e+00> : vector<10xf32>
    %12 = vector.multi_reduction <add>, %11, %cst_7 [1] : vector<10x320xf32> to vector<10xf32>
    %13 = vector.shape_cast %12 : vector<10xf32> to vector<10x1xf32>
    %cst_8 = arith.constant 3.200000e+02 : f32
    %14 = vector.broadcast %cst_8 : f32 to vector<10x1xf32>
    %15 = arith.divf %13, %14 : vector<10x1xf32>
    %cst_9 = arith.constant 9.99999974E-6 : f32
    %16 = vector.broadcast %cst_9 : f32 to vector<10x1xf32>
    %17 = arith.addf %15, %16 : vector<10x1xf32>
    %18 = math.rsqrt %17 : vector<10x1xf32>
    %19 = vector.broadcast %18 : vector<10x1xf32> to vector<10x320xf32>
    %20 = arith.mulf %10, %19 : vector<10x320xf32>
    %21 = vector.broadcast %1 : vector<10x1xf32> to vector<10x320xf32>
    %22 = arith.mulf %20, %21 : vector<10x320xf32>
    %23 = vector.broadcast %2 : vector<10x1xf32> to vector<10x320xf32>
    %24 = arith.addf %22, %23 : vector<10x320xf32>
    %cst_10 = arith.constant 0.000000e+00 : f32
    %25 = vector.broadcast %cst_10 : f32 to vector<10x320xf32>
    %26 = arith.maximumf %24, %25 : vector<10x320xf32>
    %27 = math.tanh %26 : vector<10x320xf32>
    %c0_11 = arith.constant 0 : index
    %c0_12 = arith.constant 0 : index
    %28 = vector.load %arg2[%c0_11, %c0_12] : memref<10x320xf32, #tpu.memory_space<vmem>>, vector<10x320xf32>
    tpu.vector_store %arg2[%c0_11, %c0_12], %27 {strides = array<i32>} : memref<10x320xf32, #tpu.memory_space<vmem>>, vector<10x320xf32>,
    return
  }
}

</mosaic_0001>

<bundles_post_ra>
// kernel: model_tanh_forward.1
= control target key start
LH: loop header
LB: loop body
LE: loop exit
PB: predicated region body
PF: predicated region fallthrough
CT: control target
= control target key end

     0   :  { %vm32_vm0 = vcmask 1040384   ;;  %v345_v3 = vmov 0.0   ;;  %vm25_vm1 = vcmask 203776   ;;  %v346_v15 = vmov 25   ;;  %s433_s1 = inlined_call_operand.vmem [shape: f32[25,320], index: 1, kind: input, shape index: {}]   ;;  %s434_s0 = inlined_call_operand.vmem [shape: f32[10,27], index: 0, kind: input, shape index: {}]   ;;  %s435_s2 = inlined_call_operand.vmem [shape: f32[10,320], index: 2, kind: output, shape index: {}]  }
   0x1   :  { %v23_v0 = vld [vmem:[%s433_s1 + $0x50] sm:$0x1]  ;;  %v22_v1 = vld [vmem:[%s433_s1 + $0x48] sm:$0x1]  ;;  %v24_v2 = vld [vmem:[%s433_s1 + $0x58] sm:$0x1]  ;;  %106 = vmatprep.mubr.f32.mxu0 %v345_v3  ;;  %326 = vset.pattern.permute.xlu1 %v346_v15 }
   0x2   :  { %298 = vmatprep.subr.msk.mxu0 %vm32_vm0, %v23_v0  ;;  %311 = vmatprep.subr.msk.mxu1 %vm32_vm0, %v24_v2  ;;  %v20_v4 = vld [vmem:[%s433_s1 + $0x38] sm:$0xff]  ;;  %v19_v5 = vld [vmem:[%s433_s1 + $0x30] sm:$0xff]  ;;  %v21_v6 = vld [vmem:[%s433_s1 + $0x40] sm:$0xff]  ;;  %v347_v16 = vmov 26   ;;  %vm200_vm2 = vcmask 1041408   ;;  %vm204_vm3 = vcmask 517120  }
   0x3   :  { %299 = vmatpush1.msk.msra.mxu0 %vm32_vm0, %v22_v1  ;;  %312 = vmatpush3.msk.msra.mxu1 %vm32_vm0, %v24_v2  ;;  %v17_v7 = vld [vmem:[%s433_s1 + $0x20] sm:$0xff]  ;;  %v18_v8 = vld [vmem:[%s433_s1 + $0x28] sm:$0xff]  ;;  %v16_v9 = vld [vmem:[%s433_s1 + $0x18] sm:$0xff]  ;;  %vm195_vm4 = vcmask 523264  }
   0x4   :  { %68 = vmatprep.subr.mxu0 %v20_v4  ;;  %313 = vmatprep.subr.mxu1 %v21_v6  ;;  %v14_v10 = vld [vmem:[%s433_s1 + $0x8] sm:$0xff]  ;;  %v15_v11 = vld [vmem:[%s433_s1 + $0x10] sm:$0xff]  ;;  %v13_v12 = vld [vmem:[%s433_s1] sm:$0xff] }
   0x5   :  { %69 = vmatpush1.msra.mxu0 %v19_v5  ;;  %314 = vmatpush3.msra.mxu1 %v21_v6  ;;  %v11_v13 = vld [vmem:[%s434_s0] sm:$0xff]  ;;  %v12_v14 = vld [vmem:[%s434_s0 + $0x8] sm:$0x3] }
   0x6   :  { %70 = vmatprep.subr.mxu0 %v17_v7  ;;  %315 = vmatprep.subr.mxu1 %v18_v8 }
   0x7   :  { %71 = vmatpush1.msra.mxu0 %v16_v9  ;;  %316 = vmatpush3.msra.mxu1 %v18_v8 }
   0x8   :  { %72 = vmatprep.subr.mxu0 %v14_v10  ;;  %317 = vmatprep.subr.mxu1 %v15_v11 }
   0x9   :  { %73 = vmatpush1.msra.mxu0 %v13_v12  ;;  %318 = vmatpush3.msra.mxu1 %v15_v11 }
   0xa   :  { %300 = vmatmul.mubr.msk.f32.vlgmr.msra.gmra.mxu0 %vm25_vm1, %v11_v13  ;;  %319 = vmatprep.mubr.msk.f32.mxu1 %vm25_vm1, %v11_v13 }
   0xb   :  { %320 = vmatmul.mubr.msk.f32.vlgmr.msra.gmra.mxu1 %vm25_vm1, %v12_v14  ;;  %112 = vmatprep.mubr.f32.mxu0 %v345_v3 }
   0xc   :  { %325 = vset.pattern.permute.xlu0 %v346_v15  ;;  %253 = vperm.xlu1 %326, %v12_v14  }
   0xe   :  { %301 = vmatmul.mubr.msk.f32.gmra.mxu0 %vm25_vm1, %v12_v14 }
  0x10   :  { %327 = vset.pattern.permute.xlu1 %v347_v16 }
  0x11   :  { %263 = vperm.xlu1 %327, %v11_v13  }
  0x87   :  { %v254_v55 = vpop.permute.xlu1 %253 }
  0x8c   :  { %v264_v56 = vpop.permute.xlu1 %263 }
  0xca   :  { %v108_v17 = vpop.f32.mrf.mxu0 }
  0xcb   :  { %v321_v19 = vpop.f32.mrf.mxu1 }
  0xcc   :  { %v110_v18 = vpop.f32.mrf.mxu0  ;;  %v205_v24 = vsel %vm204_vm3, %v321_v19, 0.0 }
  0xcd   :  { %v185_v25 = vpop.f32.mrf.mxu1  ;;  %v194_v27 = vadd.f32 %v110_v18, %v108_v17 }
  0xce   :  { %v114_v20 = vpop.f32.mrf.mxu0  ;;  %v196_v29 = vsel %vm195_vm4, %v185_v25, 0.0 }
  0xcf   :  { %v201_v22 = vsel %vm200_vm2, %v114_v20, 0.0  ;;  %v197_v30 = vadd.f32 %v196_v29, %v194_v27 }
  0xd0   :  { %v116_v21 = vpop.f32.mrf.mxu0 }
  0xd1   :  { %v202_v23 = vsel %vm200_vm2, %v116_v21, 0.0 }
  0xd2   :  { %v203_v26 = vadd.f32 %v202_v23, %v201_v22 }
  0xd4   :  { %v206_v28 = vadd.f32 %v205_v24, %v203_v26 }
  0xd6   :  { %207 = vadd.xlane.f32.xlu0 %v206_v28 }
  0xda   :  { %198 = vadd.xlane.f32.xlu0 %v197_v30 }
  0xf0   :  { %249 = vperm.xlu0 %325, %v11_v13  }
  0xf4   :  { %328 = vset.pattern.permute.xlu0 %v347_v16 }
 0x15f   :  { %v208_v31 = vpop.xlane.xlu0 %207 }
 0x160   :  { %v211_v32 = vmul.f32 0.003125, %v208_v31 }
 0x162   :  { %v215_v33 = vsub.f32 %v114_v20, %v211_v32  ;;  %v216_v34 = vsub.f32 %v116_v21, %v211_v32  ;;  %v217_v42 = vsub.f32 %v321_v19, %v211_v32 }
 0x163   :  { %v199_v35 = vpop.xlane.xlu0 %198 }
 0x164   :  { %v210_v36 = vmul.f32 0.003125, %v199_v35  ;;  %v221_v37 = vmul.f32 %v215_v33, %v215_v33  ;;  %v222_v38 = vmul.f32 %v216_v34, %v216_v34  ;;  %v223_v50 = vmul.f32 %v217_v42, %v217_v42 }
 0x166   :  { %v212_v39 = vsub.f32 %v108_v17, %v210_v36  ;;  %v213_v40 = vsub.f32 %v110_v18, %v210_v36  ;;  %v214_v41 = vsub.f32 %v185_v25, %v210_v36  ;;  %v229_v46 = vsel %vm200_vm2, %v221_v37, 0.0 }
 0x167   :  { %v230_v47 = vsel %vm200_vm2, %v222_v38, 0.0  ;;  %v232_v53 = vsel %vm204_vm3, %v223_v50, 0.0 }
 0x168   :  { %v218_v43 = vmul.f32 %v212_v39, %v212_v39  ;;  %v219_v44 = vmul.f32 %v213_v40, %v213_v40  ;;  %v220_v45 = vmul.f32 %v214_v41, %v214_v41  ;;  %v231_v52 = vadd.f32 %v230_v47, %v229_v46 }
 0x16a   :  { %v224_v48 = vadd.f32 %v219_v44, %v218_v43  ;;  %v225_v49 = vsel %vm195_vm4, %v220_v45, 0.0  ;;  %v233_v54 = vadd.f32 %v232_v53, %v231_v52 }
 0x16b   :  { %v250_v0 = vpop.permute.xlu0 %249 }
 0x16c   :  { %v226_v51 = vadd.f32 %v225_v49, %v224_v48 }
 0x16e   :  { %227 = vadd.xlane.f32.xlu1 %v226_v51 }
 0x172   :  { %234 = vadd.xlane.f32.xlu1 %v233_v54 }
 0x183   :  { %267 = vperm.xlu1 %327, %v12_v14  }
 0x1f7   :  { %v228_v57 = vpop.xlane.xlu1 %227 }
 0x1f8   :  { %v236_v58 = vmul.f32 0.003125, %v228_v57 }
 0x1fa   :  { %v238_v59 = vadd.f32 1e-05, %v236_v58 }
 0x1fb   :  { %v235_v60 = vpop.xlane.xlu1 %234 }
 0x1fc   :  { %329 = vrsqrt.f32 %v238_v59  ;;  %v237_v61 = vmul.f32 0.003125, %v235_v60 }
 0x1fe   :  { %v239_v62 = vadd.f32 1e-05, %v237_v61 }
 0x1ff   :  { %v268_v18 = vpop.permute.xlu1 %267 }
 0x200   :  { %331 = vrsqrt.f32 %v239_v62 }
 0x209   :  { %v330_v63 = vpop.eup %329 }
 0x20a   :  { %v242_v1 = vmul.f32 %v330_v63, %v212_v39  ;;  %v243_v2 = vmul.f32 %v330_v63, %v213_v40  ;;  %v244_v3 = vmul.f32 %v330_v63, %v214_v41 }
 0x20c   :  { %v256_v4 = vmul.f32 %v250_v0, %v242_v1  ;;  %v257_v5 = vmul.f32 %v250_v0, %v243_v2  ;;  %v258_v6 = vmul.f32 %v250_v0, %v244_v3 }
 0x20d   :  { %v332_v7 = vpop.eup %331 }
 0x20e   :  { %v245_v8 = vmul.f32 %v332_v7, %v215_v33  ;;  %v246_v9 = vmul.f32 %v332_v7, %v216_v34  ;;  %v247_v10 = vmul.f32 %v332_v7, %v217_v42  ;;  %v270_v11 = vadd.f32 %v264_v56, %v256_v4 }
 0x20f   :  { %v271_v12 = vadd.f32 %v264_v56, %v257_v5  ;;  %v272_v13 = vadd.f32 %v264_v56, %v258_v6 }
 0x210   :  { %v259_v14 = vmul.f32 %v254_v55, %v245_v8  ;;  %v260_v15 = vmul.f32 %v254_v55, %v246_v9  ;;  %v261_v16 = vmul.f32 %v254_v55, %v247_v10  ;;  %v276_v17 = vmax.f32 %v270_v11, 0.0 }
 0x211   :  { %v277_v19 = vmax.f32 %v271_v12, 0.0  ;;  %v278_v20 = vmax.f32 %v272_v13, 0.0 }
 0x212   :  { %v273_v21 = vadd.f32 %v268_v18, %v259_v14  ;;  %v274_v22 = vadd.f32 %v268_v18, %v260_v15  ;;  %v275_v23 = vadd.f32 %v268_v18, %v261_v16  ;;  %333 = vtanh.f32 %v276_v17 }
 0x213   :  { %335 = vtanh.f32 %v277_v19 }
 0x214   :  { %v279_v24 = vmax.f32 %v273_v21, 0.0  ;;  %v280_v25 = vmax.f32 %v274_v22, 0.0  ;;  %v281_v26 = vmax.f32 %v275_v23, 0.0  ;;  %337 = vtanh.f32 %v278_v20 }
 0x216   :  { %339 = vtanh.f32 %v279_v24 }
 0x217   :  { %341 = vtanh.f32 %v280_v25 }
 0x218   :  { %343 = vtanh.f32 %v281_v26 }
 0x21f   :  { %v334_v27 = vpop.eup %333 }
 0x220   :  { %v336_v28 = vpop.eup %335  ;;  %288 = vst [vmem:[%s435_s2] sm:$0xff] %v334_v27 }
 0x221   :  { %v338_v29 = vpop.eup %337  ;;  %289 = vst [vmem:[%s435_s2 + $0x8] sm:$0xff] %v336_v28 }
 0x222   :  { %290 = vst.msk [vmem:[%s435_s2 + $0x10] sm:$0xff] %vm195_vm4, %v338_v29 }
 0x223   :  { %v340_v30 = vpop.eup %339 }
 0x224   :  { %v342_v31 = vpop.eup %341  ;;  %291 = vst [vmem:[%s435_s2 + $0x18] sm:$0x3] %v340_v30 }
 0x225   :  { %v344_v32 = vpop.eup %343  ;;  %292 = vst [vmem:[%s435_s2 + $0x20] sm:$0x3] %v342_v31 }
 0x226   :  { %293 = vst.msk [vmem:[%s435_s2 + $0x28] sm:$0x3] %vm204_vm3, %v344_v32 }

</bundles_post_ra>
